<compile_context>
chip_gen: v7x
topology: tpu7x:2x2x1
jax: 0.10.0
libtpu: 0.0.40
codegen_flags: <defaults>
</compile_context>

<pallas_src>
import functools

import jax
import jax.numpy as jnp
from jax import lax
from jax.experimental import pallas as pl
from jax.experimental.pallas import tpu as pltpu

# lhs (16, D) x rhs (TB, D), contracting both on dim 1 -> (16, TB) (batch on lanes).
_NT_DIMS = (((1,), (1,)), ((), ()))


def _round_up(n: int, m: int) -> int:
    return ((n + m - 1) // m) * m


def _mlp_erf_kernel(x_ref, w1_ref, b1_ref, w2_ref, b2_ref, w3_ref, b3_ref, o_ref):
    x = x_ref[...]                                                     # (TB, D)

    # Layer 1: (16, D) . (TB, D)^T -> (16, TB); transpose folded into the MXU op.
    h1 = lax.dot_general(w1_ref[...], x, _NT_DIMS,
                         preferred_element_type=jnp.float32)
    h1 = jnp.maximum(h1 + b1_ref[...], 0.0)                            # bias (16,1) bcast over lanes

    # Layer 2: (16, 16) @ (16, TB) -> (16, TB)
    h2 = jnp.dot(w2_ref[...], h1, preferred_element_type=jnp.float32)
    h2 = jnp.maximum(h2 + b2_ref[...], 0.0)

    # Layer 3 (16 -> 1): VPU multiply + cross-sublane reduce -> (1, TB)
    z = jnp.sum(h2 * w3_ref[...], axis=0, keepdims=True) + b3_ref[0, 0]

    o_ref[...] = lax.erf(z).astype(o_ref.dtype)                        # lane-dense row store


@functools.partial(jax.jit, static_argnames=("block_b", "vmem_limit_bytes"))
def net_16n_forward(x, params, *, block_b: int = 1024,
                    vmem_limit_bytes: int = 32 * 1024 * 1024):
    """Forward pass of Net_16N.  x: (B, ...) -> flattened to (B, D).  Returns (B, 1)."""
    x = x.reshape(x.shape[0], -1).astype(jnp.float32)     # nn.Flatten
    B, D = x.shape
    w1, b1, w2, b2, w3, b3 = (params[k] for k in ("w1", "b1", "w2", "b2", "w3", "b3"))

    # Tile size: multiple of 8 (f32 sublane rule); multiples of 128 when tiling
    # (lane-dense output blocks).  block_b default sized well under VMEM even on v7x
    # (2 bufs x TB x D x 4B ~= 256 KiB at TB=1024, D=32).
    tb = min(block_b, _round_up(B, 8))
    b_pad = _round_up(B, tb)
    if b_pad != B:
        x = jnp.pad(x, ((0, b_pad - B), (0, 0)))
    grid = (b_pad // tb,)

    def resident(arr):  # full-array block, constant index map -> stays in VMEM
        return pl.BlockSpec(arr.shape, lambda i: (0, 0))

    out = pl.pallas_call(
        _mlp_erf_kernel,
        out_shape=jax.ShapeDtypeStruct((1, b_pad), jnp.float32),
        grid=grid,
        in_specs=[
            pl.BlockSpec((tb, D), lambda i: (i, 0)),                 # x: streamed over batch
            resident(w1), resident(b1),
            resident(w2), resident(b2),
            resident(w3),
            pl.BlockSpec(memory_space=pltpu.MemorySpace.SMEM),       # b3 scalar in SMEM
        ],
        out_specs=pl.BlockSpec((1, tb), lambda i: (0, i)),           # lane-dense output slab
        compiler_params=pltpu.CompilerParams(
            dimension_semantics=("parallel",),                       # shard batch across TCs (v7x)
            vmem_limit_bytes=vmem_limit_bytes,
        ),
    )(x, w1, b1, w2, b2, w3, b3)

    return out[0, :B].reshape(B, 1)
    # TODO(synk): optional bf16 streaming of x (halves HBM bytes on this mem-bound
    # MLP) is left out to preserve strict f32 parity with the PyTorch module.


def init_params(key, d_in, hidden=16):
    """torch.nn.Linear-style init (uniform +/- 1/sqrt(fan_in)), PyTorch (out,in) layout."""
    ks = jax.random.split(key, 6)

    def linear(kw, kb, fan_in, fan_out):
        bound = 1.0 / jnp.sqrt(jnp.float32(fan_in))
        w = jax.random.uniform(kw, (fan_out, fan_in), jnp.float32, -bound, bound)
        b = jax.random.uniform(kb, (fan_out, 1), jnp.float32, -bound, bound)
        return w, b

    w1, b1 = linear(ks[0], ks[1], d_in, hidden)      # (16, D), (16, 1)
    w2, b2 = linear(ks[2], ks[3], hidden, hidden)    # (16, 16), (16, 1)
    w3, b3 = linear(ks[4], ks[5], hidden, 1)         # (1, 16), (1, 1)
    return {"w1": w1, "b1": b1, "w2": w2, "b2": b2, "w3": w3.T, "b3": b3}  # w3 as (16, 1)


def _reference(x, p):
    x = x.reshape(x.shape[0], -1)
    h1 = jnp.maximum(x @ p["w1"].T + p["b1"][:, 0], 0.0)
    h2 = jnp.maximum(h1 @ p["w2"].T + p["b2"][:, 0], 0.0)
    return lax.erf(h2 @ p["w3"] + p["b3"][0, 0])


if __name__ == "__main__":
    key = jax.random.PRNGKey(0)
    k_x, k_p, k_x2 = jax.random.split(key, 3)

    # Small case consistent with the module: batch=8, flattened features D=32.
    B, D = 8, 32
    x = jax.random.normal(k_x, (B, D), dtype=jnp.float32)
    params = init_params(k_p, D)

    out = jax.block_until_ready(net_16n_forward(x, params))
    ref = _reference(x, params)
    assert out.shape == (B, 1)
    assert jnp.allclose(out, ref, atol=1e-4, rtol=1e-4)

    # Exercise the multi-tile + ragged-padding path (3 grid steps, parallel axis).
    B2 = 300
    x2 = jax.random.normal(k_x2, (B2, D), dtype=jnp.float32)
    out2 = jax.block_until_ready(net_16n_forward(x2, params, block_b=128))
    ref2 = _reference(x2, params)
    assert out2.shape == (B2, 1)
    assert jnp.allclose(out2, ref2, atol=1e-4, rtol=1e-4)

    print("KERNEL_OK")
</pallas_src>

<mosaic_0001>
module attributes {stable_mosaic.version = 11 : i64} {
  func.func @_mlp_erf_kernel(%arg0: i32, %arg1: memref<8x32xf32, #tpu.memory_space<vmem>>, %arg2: memref<16x32xf32, #tpu.memory_space<vmem>>, %arg3: memref<16x1xf32, #tpu.memory_space<vmem>>, %arg4: memref<16x16xf32, #tpu.memory_space<vmem>>, %arg5: memref<16x1xf32, #tpu.memory_space<vmem>>, %arg6: memref<16x1xf32, #tpu.memory_space<vmem>>, %arg7: memref<1x1xf32, #tpu.memory_space<smem>>, %arg8: memref<1x8xf32, #tpu.memory_space<vmem>>) attributes {dimension_semantics = [#tpu.dimension_semantics<parallel>], iteration_bounds = array<i64: 1>, scalar_prefetch = 0 : i64, scratch_operands = 0 : i64, tpu.core_type = #tpu.core_type<tc>, window_params = [{transform_indices = @transform_0, window_bounds = array<i64: 8, 32>}, {pipeline_mode = #tpu.pipeline_mode<synchronous>, transform_indices = @transform_1, window_bounds = array<i64: 16, 32>}, {pipeline_mode = #tpu.pipeline_mode<synchronous>, transform_indices = @transform_2, window_bounds = array<i64: 16, 1>}, {pipeline_mode = #tpu.pipeline_mode<synchronous>, transform_indices = @transform_3, window_bounds = array<i64: 16, 16>}, {pipeline_mode = #tpu.pipeline_mode<synchronous>, transform_indices = @transform_4, window_bounds = array<i64: 16, 1>}, {pipeline_mode = #tpu.pipeline_mode<synchronous>, transform_indices = @transform_5, window_bounds = array<i64: 16, 1>}, {transform_indices = @transform_6, window_bounds = array<i64: 1, 1>}, {transform_indices = @transform_7, window_bounds = array<i64: 1, 8>}]} {
    %c0 = arith.constant 0 : index
    %c0_0 = arith.constant 0 : index
    %0 = vector.load %arg1[%c0, %c0_0] : memref<8x32xf32, #tpu.memory_space<vmem>>, vector<8x32xf32>
    %c0_1 = arith.constant 0 : index
    %c0_2 = arith.constant 0 : index
    %1 = vector.load %arg2[%c0_1, %c0_2] : memref<16x32xf32, #tpu.memory_space<vmem>>, vector<16x32xf32>
    %cst = arith.constant dense<0.000000e+00> : vector<16x8xf32>
    %2 = tpu.matmul %1, %0, %cst {dimension_numbers = #tpu.dot_dimension_numbers<[1], [1], [0], [0], [0, 0, 1, 0], [], []>} : vector<16x32xf32>, vector<8x32xf32>, vector<16x8xf32> -> vector<16x8xf32>
    %c0_3 = arith.constant 0 : index
    %c0_4 = arith.constant 0 : index
    %3 = vector.load %arg3[%c0_3, %c0_4] : memref<16x1xf32, #tpu.memory_space<vmem>>, vector<16x1xf32>
    %4 = vector.broadcast %3 : vector<16x1xf32> to vector<16x8xf32>
    %5 = arith.addf %2, %4 : vector<16x8xf32>
    %cst_5 = arith.constant 0.000000e+00 : f32
    %6 = vector.broadcast %cst_5 : f32 to vector<16x8xf32>
    %7 = arith.maximumf %5, %6 : vector<16x8xf32>
    %c0_6 = arith.constant 0 : index
    %c0_7 = arith.constant 0 : index
    %8 = vector.load %arg4[%c0_6, %c0_7] : memref<16x16xf32, #tpu.memory_space<vmem>>, vector<16x16xf32>
    %cst_8 = arith.constant dense<0.000000e+00> : vector<16x8xf32>
    %9 = tpu.matmul %8, %7, %cst_8 {dimension_numbers = #tpu.dot_dimension_numbers<[1], [0], [0], [1], [0, 0, 1, 1], [], []>} : vector<16x16xf32>, vector<16x8xf32>, vector<16x8xf32> -> vector<16x8xf32>
    %c0_9 = arith.constant 0 : index
    %c0_10 = arith.constant 0 : index
    %10 = vector.load %arg5[%c0_9, %c0_10] : memref<16x1xf32, #tpu.memory_space<vmem>>, vector<16x1xf32>
    %11 = vector.broadcast %10 : vector<16x1xf32> to vector<16x8xf32>
    %12 = arith.addf %9, %11 : vector<16x8xf32>
    %cst_11 = arith.constant 0.000000e+00 : f32
    %13 = vector.broadcast %cst_11 : f32 to vector<16x8xf32>
    %14 = arith.maximumf %12, %13 : vector<16x8xf32>
    %c0_12 = arith.constant 0 : index
    %c0_13 = arith.constant 0 : index
    %15 = vector.load %arg6[%c0_12, %c0_13] : memref<16x1xf32, #tpu.memory_space<vmem>>, vector<16x1xf32>
    %16 = vector.broadcast %15 : vector<16x1xf32> to vector<16x8xf32>
    %17 = arith.mulf %14, %16 : vector<16x8xf32>
    %cst_14 = arith.constant dense<0.000000e+00> : vector<8xf32>
    %18 = vector.multi_reduction <add>, %17, %cst_14 [0] : vector<16x8xf32> to vector<8xf32>
    %19 = vector.shape_cast %18 : vector<8xf32> to vector<1x8xf32>
    %c0_15 = arith.constant 0 : index
    %c0_16 = arith.constant 0 : index
    %20 = memref.load %arg7[%c0_15, %c0_16] : memref<1x1xf32, #tpu.memory_space<smem>>
    %21 = vector.broadcast %20 : f32 to vector<1x8xf32>
    %22 = arith.addf %19, %21 : vector<1x8xf32>
    %23 = math.erf %22 : vector<1x8xf32>
    %c0_17 = arith.constant 0 : index
    %c0_18 = arith.constant 0 : index
    %24 = vector.load %arg8[%c0_17, %c0_18] : memref<1x8xf32, #tpu.memory_space<vmem>>, vector<1x8xf32>
    tpu.vector_store %arg8[%c0_17, %c0_18], %23 {strides = array<i32>} : memref<1x8xf32, #tpu.memory_space<vmem>>, vector<1x8xf32>,
    return
  }
  func.func @transform_0(%arg0: i32) -> (i32, i32) {
    %c0_i32 = arith.constant 0 : i32
    %c0_i32_0 = arith.constant 0 : i32
    return %arg0, %c0_i32 : i32, i32
  }
  func.func @transform_1(%arg0: i32) -> (i32, i32) {
    %c0_i32 = arith.constant 0 : i32
    %c0_i32_0 = arith.constant 0 : i32
    %c0_i32_1 = arith.constant 0 : i32
    return %c0_i32, %c0_i32_0 : i32, i32
  }
  func.func @transform_2(%arg0: i32) -> (i32, i32) {
    %c0_i32 = arith.constant 0 : i32
    %c0_i32_0 = arith.constant 0 : i32
    %c0_i32_1 = arith.constant 0 : i32
    return %c0_i32, %c0_i32_0 : i32, i32
  }
  func.func @transform_3(%arg0: i32) -> (i32, i32) {
    %c0_i32 = arith.constant 0 : i32
    %c0_i32_0 = arith.constant 0 : i32
    %c0_i32_1 = arith.constant 0 : i32
    return %c0_i32, %c0_i32_0 : i32, i32
  }
  func.func @transform_4(%arg0: i32) -> (i32, i32) {
    %c0_i32 = arith.constant 0 : i32
    %c0_i32_0 = arith.constant 0 : i32
    %c0_i32_1 = arith.constant 0 : i32
    return %c0_i32, %c0_i32_0 : i32, i32
  }
  func.func @transform_5(%arg0: i32) -> (i32, i32) {
    %c0_i32 = arith.constant 0 : i32
    %c0_i32_0 = arith.constant 0 : i32
    %c0_i32_1 = arith.constant 0 : i32
    return %c0_i32, %c0_i32_0 : i32, i32
  }
  func.func @transform_6(%arg0: i32) -> (i32, i32) {
    %c0_i32 = arith.constant 0 : i32
    %c0_i32_0 = arith.constant 0 : i32
    %c0_i32_1 = arith.constant 0 : i32
    return %c0_i32, %c0_i32_0 : i32, i32
  }
  func.func @transform_7(%arg0: i32) -> (i32, i32) {
    %c0_i32 = arith.constant 0 : i32
    %c0_i32_0 = arith.constant 0 : i32
    return %c0_i32, %arg0 : i32, i32
  }
}

</mosaic_0001>

<bundles_post_ra>
// kernel: net_16n_forward.1
= control target key start
LH: loop header
LB: loop body
LE: loop exit
PB: predicated region body
PF: predicated region fallthrough
CT: control target
= control target key end

     0   :  { %vm43_vm0 = vcmask 261120   ;;  %v330_v4 = vmov 0   ;;  %s422_s0 = inlined_call_operand.vmem [shape: f32[8,32], index: 0, kind: input, shape index: {}]   ;;  %s423_s1 = inlined_call_operand.vmem [shape: f32[16,32], index: 1, kind: input, shape index: {}]   ;;  %s424_s2 = inlined_call_operand.vmem [shape: f32[16,1], index: 2, kind: input, shape index: {}]   ;;  %s425_s3 = inlined_call_operand.vmem [shape: f32[16,16], index: 3, kind: input, shape index: {}]   ;;  %s426_s4 = inlined_call_operand.vmem [shape: f32[16,1], index: 4, kind: input, shape index: {}]   ;;  %s427_s5 = inlined_call_operand.vmem [shape: f32[16,1], index: 5, kind: input, shape index: {}]   ;;  %s428_s6 = inlined_call_operand.<no memory space> [shape: f32[1,1], index: 6, kind: input, shape index: {}]   ;;  %s429_s7 = inlined_call_operand.hbm [shape: f32[1,8], index: 7, kind: output, shape index: {}]  }
   0x1   :  { %v28_v0 = vld [vmem:[%s422_s0] sm:$0xff]  ;;  %v30_v3 = vld [vmem:[%s423_s1 + $0x8] sm:$0xff]  ;;  %302 = vset.pattern.permute.xlu0 %v330_v4 }
   0x2   :  { %v29_v1 = vld [vmem:[%s423_s1] sm:$0xff]  ;;  %284 = vmatprep.subr.msk.mxu0 %vm43_vm0, %v28_v0 }
   0x3   :  { %286 = vmatprep.mubr.msk.f32.mxu0 %vm43_vm0, %v29_v1  ;;  %v31_v2 = vld [vmem:[%s424_s2] sm:$0xff]  ;;  %285 = vmatpush3.xpose.msk.msra.mxu0 %vm43_vm0, %v28_v0 }
   0x4   :  { %13 = vsyncpa [#allocation4], 0  ;;  %35 = vperm.xlu0 %302, %v31_v2   ;;  %303 = vset.pattern.permute.xlu1 %v330_v4  ;;  %v32_v5 = vld [vmem:[%s424_s2 + $0x8] sm:$0xff]  ;;  %v228_v6 = vld [vmem:[%s427_s5] sm:$0xff]  ;;  %vm144_vm1 = vcmask 130048   ;;  %vm242_vm2 = vcmask 64512   ;;  %v253_v41 = vstv %s428_s6 }
   0x5   :  { %v130_v7 = vld [vmem:[%s425_s3] sm:$0xff]  ;;  %v133_v9 = vld [vmem:[%s426_s4 + $0x8] sm:$0xff]  ;;  %vm256_vm3 = vcmask 57344  }
   0x6   :  { %287 = vmatmul.mubr.msk.f32.vlgmr.msra.gmra.mrb[0].mxu0 %vm43_vm0, %v30_v3  ;;  %293 = vmatprep.mubr.msk.f32.mxu1 %vm144_vm1, %v130_v7  ;;  %v132_v8 = vld [vmem:[%s426_s4] sm:$0xff]  ;;  %v229_v10 = vld [vmem:[%s427_s5 + $0x8] sm:$0xff]  ;;  %s331_s5 = smov [#allocation3]  }
   0x7   :  { %136 = vperm.xlu1 %303, %v132_v8   ;;  %v131_v20 = vld [vmem:[%s425_s3 + $0x8] sm:$0xff]  ;;  %s264_s20 = sshll.u32 %s331_s5, 4  ;;  %s265_s20 = int_to_ptr.vmem [resolvable:$true] %s264_s20 }
   0x8   :  { %40 = vperm.xlu0 %302, %v32_v5   ;;  %s306_s21 = scalar_lea.vmem %s265_s20, 16  ;;  %s310_s22 = scalar_lea.vmem %s265_s20, 32 }
   0x9   :  { %p307_p0 = scmp.ne.s32.totalorder %s265_s20, %s306_s21  ;;  %p311_p1 = scmp.lt.s32.totalorder %s265_s20, %s265_s20 }
   0xa   :  { %p312_p2 = scmp.lt.s32.totalorder %s310_s22, %s306_s21 }
   0xb   :  { %141 = vperm.xlu1 %303, %v133_v9  }
   0xc   :  { %232 = vperm.xlu0 %302, %v228_v6   ;;  %p313_p3 = por %p312_p2, %p311_p1 }
   0xe   :  { %p314_p4 = pnand %p313_p3, %p307_p0 }
   0xf   :  { %237 = vperm.xlu1 %303, %v229_v10  }
  0x83   :  { %v36_v11 = vpop.permute.xlu0 %35 }
  0x86   :  { %v137_v21 = vpop.permute.xlu1 %136 }
  0x87   :  { %v41_v12 = vpop.permute.xlu0 %40 }
  0x8a   :  { %v142_v22 = vpop.permute.xlu1 %141 }
  0x8b   :  { %v233_v30 = vpop.permute.xlu0 %232 }
  0x8e   :  { %v238_v28 = vpop.permute.xlu1 %237 }
  0xd9   :  { %v288_v13 = vpop.f32.mrb[0].mxu0 }
  0xda   :  { %v125_v14 = vadd.f32 %v288_v13, %v41_v12  ;;  %v119_v15 = vpop.f32.mrb[1].mxu0 }
  0xdb   :  { %v120_v16 = vadd.f32 %v119_v15, %v36_v11 }
  0xdc   :  { %v129_v17 = vmax.f32 %v125_v14, 0.0 }
  0xdd   :  { %v128_v18 = vmax.f32 %v120_v16, 0.0 }
  0xdf   :  { %v296_v19 = vpack.c.bf16 %v129_v17, %v128_v18 }
  0xe1   :  { %297 = vmatprep.subr.bf16.mxu1 %v296_v19 }
  0xe2   :  { %299 = vmatpush3.bf16.msra.mxu1 %v296_v19 }
  0xe5   :  { %294 = vmatmul.mubr.msk.f32.vlgmr.msra.gmra.mrb[0].mxu1 %vm144_vm1, %v131_v20 }
 0x1b8   :  { %v295_v23 = vpop.f32.mrb[0].mxu1 }
 0x1b9   :  { %v223_v24 = vadd.f32 %v295_v23, %v142_v22  ;;  %v217_v25 = vpop.f32.mrb[1].mxu1 }
 0x1ba   :  { %v218_v26 = vadd.f32 %v217_v25, %v137_v21 }
 0x1bb   :  { %v227_v27 = vmax.f32 %v223_v24, 0.0 }
 0x1bc   :  { %v226_v29 = vmax.f32 %v218_v26, 0.0 }
 0x1bd   :  { %v241_v31 = vmul.f32 %v238_v28, %v227_v27 }
 0x1be   :  { %v240_v32 = vmul.f32 %v233_v30, %v226_v29 }
 0x1bf   :  { %v244_v33 = vsel %vm242_vm2, %v241_v31, 0.0 }
 0x1c0   :  { %v243_v34 = vsel %vm242_vm2, %v240_v32, 0.0 }
 0x1c1   :  { %v245_v35 = vadd.f32 %v244_v33, %v243_v34 }
 0x1c3   :  { %v246_v36 = vrot.slane %v245_v35, 4 }
 0x1c5   :  { %v247_v37 = vadd.f32 %v246_v36, %v245_v35 }
 0x1c7   :  { %v248_v38 = vrot.slane %v247_v37, 2 }
 0x1c9   :  { %v249_v39 = vadd.f32 %v248_v38, %v247_v37 }
 0x1cb   :  { %v250_v40 = vrot.slane %v249_v39, 1 }
 0x1cd   :  { %v251_v42 = vadd.f32 %v250_v40, %v249_v39 }
 0x1cf   :  { %v254_v43 = vadd.f32 %v253_v41, %v251_v42 }
 0x1d1   :  { %304 = verf.f32 %v254_v43 }
 0x1db   :  { %v305_v44 = vpop.eup %304 }
 0x1dc   :  { %257 = vst.msk [vmem:[#allocation3] sm:$0x1] %vm256_vm3, %v305_v44 }
 0x1dd   :  { %317 = shalt.err (!%p314_p4)
}
 0x1de   :  { %s318_s6 = scalar_lea.hbm %s429_s7, 16 }
 0x1df   :  { %p319_p5 = scmp.ne.s32.totalorder %s429_s7, %s318_s6  ;;  %p322_p6 = scmp.lt.u32.totalorder %s318_s6, %s429_s7 }
 0x1e1   :  { %p324_p7 = pnand %p322_p6, %p319_p5 }
 0x1e3   :  { %327 = shalt.err (!%p324_p7)
}
 0x1e4   :  { %267 = dma.vmem_to_hbm [thread:$0]  %s265_s20, 16, %s429_s7, [#allocation4]  }
 0x1e5   :  { %328 = dma.done.wait [#allocation4], 16  }
 0x1e6   :  { %329 = vsyncadd [#allocation4], 4294967280 }
 0x1e7   :  { %271 = vsyncpa [#allocation4], 1 }

</bundles_post_ra>
